<compile_context>
chip_gen: v6e
topology: v6e:2x2x1
jax: 0.10.0
libtpu: 0.0.40
codegen_flags: <defaults>
</compile_context>

<pallas_src>
import math

import jax
import jax.numpy as jnp
from jax.experimental import pallas as pl
from jax.experimental.pallas import tpu as pltpu


def make_pe_table(d_model: int, max_seq_length: int = 5000) -> jnp.ndarray:
    """Deterministic sinusoidal PE buffer, identical to the PyTorch __init__."""
    position = jnp.arange(max_seq_length, dtype=jnp.float32)[:, None]           # [L, 1]
    div_term = jnp.exp(
        jnp.arange(0, d_model, 2, dtype=jnp.float32) * (-math.log(10000.0) / d_model)
    )                                                                            # [D/2]
    angles = position * div_term                                                 # [L, D/2]
    pe = jnp.zeros((max_seq_length, d_model), dtype=jnp.float32)
    pe = pe.at[:, 0::2].set(jnp.sin(angles))
    pe = pe.at[:, 1::2].set(jnp.cos(angles))
    return pe


def _pos_enc_kernel(x_ref, pe_ref, o_ref):
    # x_ref / pe_ref / o_ref: (TS, D) tiles (batch dim squeezed) -> plain 2-D VPU add.
    o_ref[...] = (x_ref[...] + pe_ref[...]).astype(o_ref.dtype)


def _choose_seq_tile(s: int, d: int, itemsize: int, target_bytes: int) -> int:
    """Largest multiple-of-8 divisor of s whose (ts, d) tile stays <= target_bytes."""
    if s <= 8:
        return s
    best_fit = None
    smallest = None
    for ts in range(8, s + 1, 8):
        if s % ts:
            continue
        if smallest is None:
            smallest = ts
        if ts * d * itemsize <= target_bytes:
            best_fit = ts
    if best_fit is not None:
        return best_fit
    if smallest is not None:
        return smallest
    return s  # no multiple-of-8 divisor -> single full-sequence tile (block == full dim)


def positional_encoding(x: jnp.ndarray, pe: jnp.ndarray,
                        *, target_tile_bytes: int = 2 * 1024 * 1024) -> jnp.ndarray:
    """x: [B, S, D]; pe: [max_seq_length, D]. Returns x + pe[:S, :]."""
    b, s, d = x.shape
    assert pe.shape[0] >= s and pe.shape[1] == d

    if pe.dtype != x.dtype:
        pe = pe.astype(x.dtype)  # match dtype: half the pe DMA bytes for bf16, clean stores

    # --- lane-dense last dim: fold sequence rows if d is not a multiple of 128 ---
    fold = 1
    if d % 128 != 0:
        for f in range(2, s + 1):
            if (f * d) % 128 == 0 and s % f == 0:
                fold = f
                break
    if fold > 1:
        s_f, d_f = s // fold, d * fold
        x_in = x.reshape(b, s_f, d_f)
        pe_in = pe[:s].reshape(s_f, d_f)  # folding needs the explicit slice+reshape
    else:
        s_f, d_f = s, d
        x_in = x
        pe_in = pe  # full table; the pe[:S] slice is folded into the BlockSpec index_map

    itemsize = jnp.dtype(x.dtype).itemsize
    ts = _choose_seq_tile(s_f, d_f, itemsize, target_tile_bytes)
    if ts % 8 != 0:
        # Tile not 8-aligned -> block must equal the full pe dims: trim pe to exactly s_f rows.
        pe_in = pe_in[:s_f]

    grid = (b, s_f // ts)

    out = pl.pallas_call(
        _pos_enc_kernel,
        out_shape=jax.ShapeDtypeStruct((b, s_f, d_f), x.dtype),
        grid_spec=pltpu.PrefetchScalarGridSpec(
            num_scalar_prefetch=0,
            grid=grid,
            in_specs=[
                # x: one (TS, D) slab of batch element i, sequence tile j.
                pl.BlockSpec((pl.Squeezed(), ts, d_f), lambda i, j: (i, j, 0)),
                # pe: matching (TS, D) rows, selected straight from the (un-sliced) table.
                pl.BlockSpec((ts, d_f), lambda i, j: (j, 0)),
            ],
            out_specs=pl.BlockSpec((pl.Squeezed(), ts, d_f), lambda i, j: (i, j, 0)),
        ),
        compiler_params=pltpu.CompilerParams(
            dimension_semantics=("parallel", "parallel"),
        ),
        cost_estimate=pl.CostEstimate(
            flops=b * s * d,
            transcendentals=0,
            bytes_accessed=(2 * b * s * d + s * d) * itemsize,
        ),
    )(x_in, pe_in)

    return out.reshape(b, s, d) if fold > 1 else out


if __name__ == "__main__":
    max_seq_length = 64  # small, deterministic buffer (module default is 5000)

    # Primary case: lane-dense d_model (multiple of 128), exercises the S-tiled path.
    batch, seq_len, d_model = 2, 16, 128
    x = jax.random.normal(jax.random.PRNGKey(0), (batch, seq_len, d_model), dtype=jnp.float32)
    pe = make_pe_table(d_model, max_seq_length)
    out = jax.block_until_ready(positional_encoding(x, pe))
    ref = x + pe[:seq_len, :][None, :, :]
    assert out.shape == (batch, seq_len, d_model)
    assert jnp.allclose(out, ref, atol=1e-6), "mismatch vs reference (lane-dense path)"

    # Narrow d_model case (d=32): exercises the lane-dense folding path.
    b2, s2, d2 = 2, 8, 32
    x2 = jax.random.normal(jax.random.PRNGKey(0), (b2, s2, d2), dtype=jnp.float32)
    pe2 = make_pe_table(d2, max_seq_length)
    out2 = jax.block_until_ready(positional_encoding(x2, pe2))
    ref2 = x2 + pe2[:s2, :][None, :, :]
    assert out2.shape == (b2, s2, d2)
    assert jnp.allclose(out2, ref2, atol=1e-6), "mismatch vs reference (folded path)"

    print("KERNEL_OK")
</pallas_src>

<mosaic_0001>
module attributes {stable_mosaic.version = 11 : i64} {
  func.func @_pos_enc_kernel(%arg0: i32, %arg1: i32, %arg2: memref<1x16x128xf32, #tpu.memory_space<vmem>>, %arg3: memref<16x128xf32, #tpu.memory_space<vmem>>, %arg4: memref<1x16x128xf32, #tpu.memory_space<vmem>>) attributes {dimension_semantics = [#tpu.dimension_semantics<parallel>, #tpu.dimension_semantics<parallel>], iteration_bounds = array<i64: 2, 1>, scalar_prefetch = 0 : i64, scratch_operands = 0 : i64, tpu.core_type = #tpu.core_type<tc>, window_params = [{transform_indices = @transform_0, window_bounds = array<i64: 1, 16, 128>}, {transform_indices = @transform_1, window_bounds = array<i64: 16, 128>}, {transform_indices = @transform_2, window_bounds = array<i64: 1, 16, 128>}]} {
    %c0 = arith.constant 0 : index
    %c0_0 = arith.constant 0 : index
    %c0_1 = arith.constant 0 : index
    %0 = vector.load %arg2[%c0, %c0_0, %c0_1] : memref<1x16x128xf32, #tpu.memory_space<vmem>>, vector<1x16x128xf32>
    %1 = vector.shape_cast %0 : vector<1x16x128xf32> to vector<16x128xf32>
    %c0_2 = arith.constant 0 : index
    %c0_3 = arith.constant 0 : index
    %2 = vector.load %arg3[%c0_2, %c0_3] : memref<16x128xf32, #tpu.memory_space<vmem>>, vector<16x128xf32>
    %3 = arith.addf %1, %2 : vector<16x128xf32>
    %c0_4 = arith.constant 0 : index
    %c0_5 = arith.constant 0 : index
    %c0_6 = arith.constant 0 : index
    %4 = vector.load %arg4[%c0_4, %c0_5, %c0_6] : memref<1x16x128xf32, #tpu.memory_space<vmem>>, vector<1x16x128xf32>
    %5 = vector.shape_cast %4 : vector<1x16x128xf32> to vector<16x128xf32>
    %6 = vector.shape_cast %3 : vector<16x128xf32> to vector<1x16x128xf32>
    tpu.vector_store %arg4[%c0_4, %c0_5, %c0_6], %6 {strides = array<i32>} : memref<1x16x128xf32, #tpu.memory_space<vmem>>, vector<1x16x128xf32>,
    return
  }
  func.func @transform_0(%arg0: i32, %arg1: i32) -> (i32, i32, i32) {
    %c0_i32 = arith.constant 0 : i32
    %c0_i32_0 = arith.constant 0 : i32
    return %arg0, %arg1, %c0_i32 : i32, i32, i32
  }
  func.func @transform_1(%arg0: i32, %arg1: i32) -> (i32, i32) {
    %c0_i32 = arith.constant 0 : i32
    %c0_i32_0 = arith.constant 0 : i32
    return %arg1, %c0_i32 : i32, i32
  }
  func.func @transform_2(%arg0: i32, %arg1: i32) -> (i32, i32, i32) {
    %c0_i32 = arith.constant 0 : i32
    %c0_i32_0 = arith.constant 0 : i32
    return %arg0, %arg1, %c0_i32 : i32, i32, i32
  }
}

</mosaic_0001>

<bundles_post_ra>
// kernel: tpu_custom_call.1
= control target key start
LH: loop header
LB: loop body
LE: loop exit
PB: predicated region body
PF: predicated region fallthrough
CT: control target
= control target key end

     0   :  { %7 = vsyncpa [#allocation3], 0  ;;  %s774_s0 = inlined_call_operand.hbm [shape: f32[2,16,128], index: 0, kind: input, shape index: {}]   ;;  %s775_s1 = inlined_call_operand.hbm [shape: f32[64,128], index: 1, kind: input, shape index: {}]   ;;  %s776_s2 = inlined_call_operand.hbm [shape: f32[2,16,128], index: 2, kind: output, shape index: {}]  }
   0x1   :  { %9 = vsyncpa [#allocation3 + $0x1], 0 }
   0x2   :  { %10 = vsyncpa [#allocation6], 0 }
   0x3   :  { %11 = vsyncpa [#allocation4], 0 }
   0x4   :  { %13 = vsyncpa [#allocation4 + $0x1], 0  ;;  %s587_s9 = smov 0   ;;  %s589_s10 = smov 0  }
   0x5   :  { %s591_s11 = smov 0   ;;  %s593_s12 = smov 0  }
   0x6   :  { %s595_s13 = smov 0   ;;  %s597_s14 = smov 0  }
   0x7 LB: > { %s329_s15 = sadd.s32 4294967295, %s563_s14   ;;  %s330_s16 = sadd.s32 4294967294, %s563_s14   ;;  %s563_s14 = sphi %s597_s14, %s19_s14   ;;  %s559_s13 = sphi %s595_s13, %s796_s13   ;;  %s555_s12 = sphi %s593_s12, %s795_s12   ;;  %s551_s11 = sphi %s591_s11, %s794_s11   ;;  %s547_s10 = sphi %s589_s10, %s793_s10   ;;  %s543_s9 = sphi %s587_s9, %s792_s9  }
   0x8   : > { %p53_p0 = scmp.ne.s32.totalorder %s547_s10, %s543_s9  ;;  %p621_p1 = scmp.eq.s32.totalorder %s329_s15, 0 }
   0x9   : > { %p625_p2 = scmp.eq.s32.totalorder %s329_s15, 1  ;;  %p111_p3 = scmp.eq.s32.totalorder %s330_s16, 1 }
   0xa   : > { %p631_p4 = por %p621_p1, %p53_p0  ;;  %p331_p5 = scmp.ge.s32.totalorder %s563_s14, 1 }
   0xb   : > { %p636_p6 = por %p111_p3, %p53_p0  ;;  %p118_p7 = scmp.lt.s32.totalorder %s563_s14, 3 }
   0xc   : > { %s781_s19 = scalar_select %p631_p4, 1, 0 }
   0xd   : > { %s782_s20 = scalar_select %p636_p6, 1, 0 }
   0xe   : > { %p641_p8 = pnand %p331_p5, %p118_p7  ;;  %s565_s22 = smov [#allocation5]  }
   0xf   : > { %s133_s23 = sshll.u32 %s565_s22, 4  ;;  %s31_s25 = sadd.s32 1, %s559_s13  ;;  %s134_s23 = int_to_ptr.vmem [resolvable:$true] %s133_s23 }
  0x10   : > { %p356_p9 = pneg %p641_p8  ;;  %s436_s26 = scalar_lea.vmem %s134_s23, 256 }
  0x11   : > { %p437_p13 = scmp.ne.s32.totalorder %s134_s23, %s436_s26  ;;  %p444_p5 = scmp.lt.s32.totalorder %s134_s23, %s134_s23 }
  0x12   : > { %p650_p11 = pnand %p356_p9, %p621_p1  ;;  %p445_p7 = scmp.lt.s32.totalorder %s436_s26, %s436_s26 }
  0x14   : > { %p427_p12 = pneg %p650_p11  ;;  %p446_p6 = por %p445_p7, %p444_p5 }
  0x16   : > { %p439_p0 = pnand %p437_p13, %p427_p12 }
  0x18   : > { %p440_p3 = pneg %p439_p0 }
  0x1a   : > { %p447_p4 = pnand %p446_p6, %p440_p3 }
  0x1c   : > { %450 = shalt.err (!%p447_p4)
}
  0x1d   : > { %s778_s27 = smov 128   ;;  %s567_s28 = smov 8  }
  0x1e   : > { %359 = dma.hbm_to_vmem [thread:$0]  (!%p650_p11), %s775_s1, 256, %s134_s23, [#allocation6], %s778_s27, %s778_s27, %s567_s28  }
  0x1f   : > { %p33_p4 = scmp.ge.s32.totalorder %s31_s25, 2  ;;  %s40_s3 = sadd.s32 1, %s551_s11 }
  0x20   : > { %p47_p6 = scmp.ne.s32.totalorder %s551_s11, %s547_s10  ;;  %p48_p9 = scmp.eq.s32.totalorder %s563_s14, 0 }
  0x21   : > { %s798_s25 = smov (%p33_p4, %s31_s25), 0  ;;  %p369_p0 = scmp.lt.s32.totalorder %s563_s14, 2 }
  0x22   : > { %p671_p12 = por %p48_p9, %p47_p6  ;;  %p677_p13 = por %p625_p2, %p47_p6 }
  0x23   : > { %s35_s6 = ssub.s32 %s559_s13, %s798_s25  ;;  %s147_s7 = sand.u32 1, %s551_s11  }
  0x24   : > { %p38_p11 = scmp.eq.s32.totalorder %s35_s6, 0  ;;  %s334_s8 = sshll.u32 %s147_s7, 4 }
  0x25   : > { %s346_s16 = sshll.u32 %s559_s13, 8  ;;  %s151_s26 = scalar_lea.vmem [#allocation2], %s334_s8 }
  0x26   : > { %s686_s15 = scalar_select %p38_p11, %s551_s11, %s40_s3  }
  0x27   : > { %s159_s24 = scalar_lea.hbm %s774_s0, %s346_s16  ;;  %s160_s29 = sshll.u32 %s151_s26, 4  ;;  %s161_s29 = int_to_ptr.vmem [resolvable:$true] %s160_s29 }
  0x28   : > { %p694_p2 = pnand %p369_p0, %p671_p12  ;;  %s148_s30 = scalar_lea.sflag [#allocation3], %s147_s7 }
  0x29   : > { %s464_s6 = scalar_lea.vmem %s161_s29, 256  ;;  %s568_s3 = smov [#allocation2]  }
  0x2a   : > { %p453_p3 = pneg %p694_p2  ;;  %p465_p5 = scmp.ne.s32.totalorder %s161_s29, %s464_s6 }
  0x2b   : > { %s469_s27 = sshll.u32 %s568_s3, 4  ;;  %s470_s27 = int_to_ptr.vmem [resolvable:$false] %s469_s27 }
  0x2c   : > { %p467_p7 = pnand %p465_p5, %p453_p3  ;;  %s471_s16 = scalar_lea.vmem %s470_s27, 512 }
  0x2d   : > { %p472_p6 = scmp.lt.s32.totalorder %s161_s29, %s470_s27  ;;  %p473_p9 = scmp.lt.s32.totalorder %s471_s16, %s464_s6 }
  0x2e   : > { %p468_p4 = pneg %p467_p7 }
  0x2f   : > { %p474_p11 = por %p473_p9, %p472_p6 }
  0x31   : > { %p475_p10 = pnand %p474_p11, %p468_p4 }
  0x33   : > { %478 = shalt.err (!%p475_p10)
}
  0x34   : > { %s788_s4 = smov 128   ;;  %172 = sbr.rel (%p641_p8) target bundleno = 85 (0x55), region = 28 }
  0x35   : > { %363 = dma.hbm_to_vmem [thread:$0]  (!%p694_p2), %s159_s24, 256, %s161_s29, %s148_s30, %s788_s4, %s788_s4, %s567_s28  }
  0x36   : > { %s708_s7 = sand.u32 (!%p641_p8), 1, %s547_s10   ;;  %p789_p12 = scmp.ne.s32.totalorder (!%p641_p8), %s781_s19, 0 }
  0x37   : > { %s338_s27 = sshll.u32 (!%p641_p8), %s708_s7, 4  ;;  %s175_s8 = scalar_lea.sflag (!%p641_p8), [#allocation3], %s708_s7 }
  0x38   : > { %s178_s22 = scalar_lea.vmem (!%p641_p8), [#allocation2], %s338_s27 }
  0x39   : > { %530 = dma.done.wait (%p789_p12), %s175_s8, 256  }
  0x3a   : > { %532 = vsyncadd (%p789_p12), %s175_s8, 4294967040 }
  0x3b   : > { %534 = dma.done.wait (%p621_p1), [#allocation6], 256  }
  0x3c   : > { %536 = vsyncadd (%p621_p1), [#allocation6], 4294967040  ;;  %s202_s21 = scalar_lea.vmem [#allocation7], %s338_s27  ;;  %s347_s23 = sshll.u32 %s555_s12, 8  ;;  %v206_v0 = vld [vmem:[%s178_s22] sm:$0xff]  ;;  %v207_v2 = vld [vmem:[%s178_s22 + $0x8] sm:$0xff] }
  0x3d   : > { %s230_s28 = sshll.u32 %s202_s21, 4  ;;  %v208_v1 = vld [vmem:[#allocation5] sm:$0xff]  ;;  %v209_v4 = vld [vmem:[#allocation5 + $0x8] sm:$0xff]  ;;  %s726_s17 = scalar_lea.hbm %s776_s2, %s347_s23  ;;  %s721_s28 = int_to_ptr.vmem [resolvable:$true] %s230_s28 }
  0x3e   : > { %v210_v3 = vadd.f32 %v208_v1, %v206_v0  ;;  %v211_v5 = vadd.f32 %v209_v4, %v207_v2  ;;  %s215_s26 = scalar_lea.sflag [#allocation4], %s708_s7  ;;  %s479_s12 = scalar_lea.vmem %s721_s28, 256 }
  0x3f   : > { %p480_p1 = scmp.ne.s32.totalorder %s721_s28, %s479_s12  ;;  %s569_s29 = smov [#allocation7]  }
  0x40   : > { %212 = vst [vmem:[%s202_s21] sm:$0xff] %v210_v3  ;;  %213 = vst [vmem:[%s202_s21 + $0x8] sm:$0xff] %v211_v5  ;;  %s483_s18 = sshll.u32 %s569_s29, 4  ;;  %s484_s18 = int_to_ptr.vmem [resolvable:$false] %s483_s18 }
  0x41   : > { %p481_p8 = pnand %p480_p1, %p677_p13  ;;  %s485_s30 = scalar_lea.vmem %s484_s18, 512 }
  0x42   : > { %p486_p0 = scmp.lt.s32.totalorder %s721_s28, %s484_s18  ;;  %p487_p2 = scmp.lt.s32.totalorder %s485_s30, %s479_s12 }
  0x43   : > { %p482_p10 = pneg %p481_p8 }
  0x44   : > { %p488_p3 = por %p487_p2, %p486_p0 }
  0x46   : > { %p489_p5 = pnand %p488_p3, %p482_p10 }
  0x48   : > { %492 = shalt.err (!%p489_p5)
}
  0x49   : > { %s493_s6 = scalar_lea.hbm %s726_s17, 256  ;;  %s497_s4 = scalar_lea.hbm %s776_s2, 512 }
  0x4a   : > { %p494_p7 = scmp.ne.s32.totalorder %s726_s17, %s493_s6  ;;  %p498_p9 = scmp.lt.s32.totalorder %s726_s17, %s776_s2 }
  0x4b   : > { %p499_p11 = scmp.lt.s32.totalorder %s497_s4, %s493_s6 }
  0x4c   : > { %p495_p4 = pnand %p494_p7, %p677_p13 }
  0x4d   : > { %p500_p12 = por %p499_p11, %p498_p9 }
  0x4e   : > { %p496_p6 = pneg %p495_p4 }
  0x50   : > { %p501_p1 = pnand %p500_p12, %p496_p6 }
  0x52   : > { %504 = shalt.err (!%p501_p1)
}
  0x53   : > { %s570_s22 = smov 128   ;;  %s571_s21 = smov 8  }
  0x54   : > { %354 = dma.vmem_to_hbm [thread:$0]  (%p677_p13), %s721_s28, 256, %s726_s17, %s215_s26, %s570_s22, %s570_s22, %s571_s21  }
  0x55 PF: > { %s245_s23 = sand.u32 1, %s543_s9   ;;  %p790_p8 = scmp.ne.s32.totalorder %s782_s20, 0 }
  0x56   : > { %p791_p10 = scmp.ge.s32.totalorder %s563_s14, 2  ;;  %s246_s19 = scalar_lea.sflag [#allocation4], %s245_s23 }
  0x58   : > { %p365_p0 = pnand %p791_p10, %p790_p8 }
  0x5a   : > { %p366_p2 = pneg %p365_p0 }
  0x5c   : > { %538 = dma.done.wait (%p366_p2), %s246_s19, 256  }
  0x5d   : > { %540 = vsyncadd (%p366_p2), %s246_s19, 4294967040  ;;  %s19_s14 = sadd.s32 1, %s563_s14   ;;  %s792_s9 = smov %s547_s10 }
  0x5e   : > { %p16_p3 = scmp.ge.s32.totalorder %s19_s14, 4   ;;  %s793_s10 = smov %s551_s11 }
  0x5f   : > { %s794_s11 = smov %s686_s15  ;;  %s795_s12 = smov %s559_s13 }
  0x60   : > { %s796_s13 = smov %s798_s25  ;;  %18 = sbr.rel (!%p16_p3) target bundleno = 7 (0x7), region = 78 }
  0x65   :  { %251 = vsyncpa [#allocation3], 1 }
  0x66   :  { %253 = vsyncpa [#allocation3 + $0x1], 1 }
  0x67   :  { %254 = vsyncpa [#allocation6], 1 }
  0x68   :  { %255 = vsyncpa [#allocation4], 1 }
  0x69   :  { %257 = vsyncpa [#allocation4 + $0x1], 1 }

</bundles_post_ra>
